<compile_context>
chip_gen: v5e
topology: v5e:2x2
jax: 0.10.0
libtpu: 0.0.40
codegen_flags: <defaults>
</compile_context>

<pallas_src>
import functools
import math

import jax
import jax.numpy as jnp
import numpy as np
from jax import lax
from jax.experimental import pallas as pl
from jax.experimental.pallas import tpu as pltpu

# Finite large-negative mask value (avoids -inf NaN hazards in the online softmax).
DEFAULT_MASK_VALUE = -0.7 * float(np.finfo(np.float32).max)


def _pick_tile(dim, target):
    """Largest tile <= target that divides dim (halving fallback). Full dim if small."""
    if dim <= target:
        return dim
    t = target
    while dim % t != 0 and t > 1:
        t //= 2
    return t


# ------------------------------------------------------------------
# Tiled matmul: y = x @ w, f32 accumulation over the K grid axis.
# ------------------------------------------------------------------
def _matmul_kernel(x_ref, w_ref, o_ref, acc_ref):
    @pl.when(pl.program_id(2) == 0)
    def _init():
        acc_ref[...] = jnp.zeros_like(acc_ref)

    acc_ref[...] += jnp.dot(x_ref[...], w_ref[...], preferred_element_type=jnp.float32)

    @pl.when(pl.program_id(2) == pl.num_programs(2) - 1)
    def _finalize():
        o_ref[...] = acc_ref[...].astype(o_ref.dtype)


def pallas_matmul(x, w, *, tm=256, tn=256, tk=512):
    M, K = x.shape
    K2, N = w.shape
    assert K == K2
    tm = _pick_tile(M, tm)
    tn = _pick_tile(N, tn)
    tk = _pick_tile(K, tk)
    grid = (M // tm, N // tn, K // tk)
    return pl.pallas_call(
        _matmul_kernel,
        out_shape=jax.ShapeDtypeStruct((M, N), x.dtype),
        grid_spec=pltpu.PrefetchScalarGridSpec(
            num_scalar_prefetch=0,
            grid=grid,
            in_specs=[
                pl.BlockSpec((tm, tk), lambda i, j, k: (i, k)),
                pl.BlockSpec((tk, tn), lambda i, j, k: (k, j)),
            ],
            out_specs=pl.BlockSpec((tm, tn), lambda i, j, k: (i, j)),
            scratch_shapes=[pltpu.VMEM((tm, tn), jnp.float32)],
        ),
        compiler_params=pltpu.CompilerParams(
            dimension_semantics=("parallel", "parallel", "arbitrary")
        ),
    )(x, w)


# ------------------------------------------------------------------
# Flash attention with fused RoPE and in-kernel causal masking.
# ------------------------------------------------------------------
def _rotate_half_mul(x, sin_signed):
    """rotate_half(x) * sin, with the +-1 sign already folded into sin_signed.

    rotate_half(x) == roll(x, D/2) * [-1]*D/2 ++ [+1]*D/2, so with the sign folded into
    sin we only need a rotation. Uses the XLU roll when the last dim is lane-aligned,
    otherwise a half-lane concatenate (small head_dim test path).
    """
    D = x.shape[-1]
    half = D // 2
    if D % 128 == 0:
        rolled = pltpu.roll(x, shift=half, axis=-1)
    else:
        rolled = jnp.concatenate([x[:, half:], x[:, :half]], axis=-1)
    return rolled * sin_signed


def _flash_attn_kernel(q_ref, k_ref, v_ref, cq_ref, sq_ref, ck_ref, sk_ref,
                       o_ref, q_sc, m_sc, l_sc, acc_sc,
                       *, sm_scale, causal, tq, tk):
    qi = pl.program_id(2)
    ki = pl.program_id(3)
    nk = pl.num_programs(3)

    @pl.when(ki == 0)
    def _init():
        m_sc[...] = jnp.full(m_sc.shape, -jnp.inf, jnp.float32)
        l_sc[...] = jnp.zeros(l_sc.shape, jnp.float32)
        acc_sc[...] = jnp.zeros(acc_sc.shape, jnp.float32)
        # RoPE on the q tile once per (b, h, qi); cached for all KV steps.
        q = q_ref[...].astype(jnp.float32)
        cos = cq_ref[...].astype(jnp.float32)
        sin = sq_ref[...].astype(jnp.float32)
        q_sc[...] = (q * cos + _rotate_half_mul(q, sin)).astype(q_sc.dtype)

    def _compute():
        # RoPE on the k tile (f32 math, MXU operands stay in the input dtype).
        k = k_ref[...].astype(jnp.float32)
        cos = ck_ref[...].astype(jnp.float32)
        sin = sk_ref[...].astype(jnp.float32)
        k_rope = (k * cos + _rotate_half_mul(k, sin)).astype(k_ref.dtype)

        # 'NT' dot_general: contract head_dim directly, no in-kernel transpose of K.
        s = lax.dot_general(q_sc[...], k_rope, (((1,), (1,)), ((), ())),
                            preferred_element_type=jnp.float32)
        s = s * sm_scale
        if causal:
            rows = qi * tq + lax.broadcasted_iota(jnp.int32, (tq, tk), 0)
            cols = ki * tk + lax.broadcasted_iota(jnp.int32, (tq, tk), 1)
            s = jnp.where(cols <= rows, s, DEFAULT_MASK_VALUE)

        m_prev = m_sc[...]
        m_new = jnp.maximum(m_prev, s.max(axis=-1, keepdims=True))
        alpha = jnp.exp(m_prev - m_new)
        p = jnp.exp(s - m_new)
        l_sc[...] = alpha * l_sc[...] + p.sum(axis=-1, keepdims=True)
        acc_sc[...] = alpha * acc_sc[...] + jnp.dot(
            p.astype(v_ref.dtype), v_ref[...], preferred_element_type=jnp.float32)
        m_sc[...] = m_new

    if causal:
        # Skip KV blocks that lie entirely above the diagonal (fully masked).
        pl.when(ki * tk <= qi * tq + (tq - 1))(_compute)
    else:
        _compute()

    @pl.when(ki == nk - 1)
    def _finalize():
        inv_l = pl.reciprocal(l_sc[...], approx=True)
        o_ref[...] = (acc_sc[...] * inv_l).astype(o_ref.dtype)


def pallas_flash_attention(q, k, v, cos, sin_signed, *, causal=True, tq=128, tk=128):
    # q: (B, Hq, S, D); k, v: (B, Hkv, S, D); cos/sin_signed: (B, S, D)
    # TODO(synk): for head_dim < 128 the MXU/lane dims are under-filled (masked stores);
    # a multi-head-per-block variant would fix that, but typical Llama D=128 is fine.
    B, Hq, S, D = q.shape
    Hkv = k.shape[1]
    n_rep = Hq // Hkv  # repeat_kv handled via index_map (h // n_rep), no HBM duplication
    tq = _pick_tile(S, tq)
    tk = _pick_tile(S, tk)
    grid = (B, Hq, S // tq, S // tk)
    sm_scale = 1.0 / math.sqrt(D)

    kernel = functools.partial(_flash_attn_kernel, sm_scale=sm_scale,
                               causal=causal, tq=tq, tk=tk)

    return pl.pallas_call(
        kernel,
        out_shape=jax.ShapeDtypeStruct((B, Hq, S, D), q.dtype),
        grid_spec=pltpu.PrefetchScalarGridSpec(
            num_scalar_prefetch=0,
            grid=grid,
            in_specs=[
                pl.BlockSpec((None, None, tq, D), lambda b, h, i, j: (b, h, i, 0)),
                pl.BlockSpec((None, None, tk, D), lambda b, h, i, j: (b, h // n_rep, j, 0)),
                pl.BlockSpec((None, None, tk, D), lambda b, h, i, j: (b, h // n_rep, j, 0)),
                pl.BlockSpec((None, tq, D), lambda b, h, i, j: (b, i, 0)),  # cos for q rows
                pl.BlockSpec((None, tq, D), lambda b, h, i, j: (b, i, 0)),  # sin for q rows
                pl.BlockSpec((None, tk, D), lambda b, h, i, j: (b, j, 0)),  # cos for k rows
                pl.BlockSpec((None, tk, D), lambda b, h, i, j: (b, j, 0)),  # sin for k rows
            ],
            out_specs=pl.BlockSpec((None, None, tq, D), lambda b, h, i, j: (b, h, i, 0)),
            scratch_shapes=[
                pltpu.VMEM((tq, D), q.dtype),        # RoPE'd q tile cache
                pltpu.VMEM((tq, 1), jnp.float32),    # running max
                pltpu.VMEM((tq, 1), jnp.float32),    # running denominator
                pltpu.VMEM((tq, D), jnp.float32),    # output accumulator
            ],
        ),
        compiler_params=pltpu.CompilerParams(
            dimension_semantics=("parallel", "parallel", "parallel", "arbitrary")
        ),
    )(q, k, v, cos, sin_signed, cos, sin_signed)


# ------------------------------------------------------------------
# ParallelLlamaAttention forward (tp_size = 1, attention_bias = False, rope_scaling=None)
# ------------------------------------------------------------------
def parallel_llama_attention(
    hidden_states,      # (B, S, H)
    position_ids,       # (B, S) int32
    w_qkv,              # (H, q_size + k_size + v_size)  (pre-transposed)
    w_o,                # (num_heads * head_dim, H)      (pre-transposed)
    *,
    num_heads,
    num_kv_heads,
    head_dim,
    rope_theta=10000.0,
    max_position_embeddings=2048,
    causal=True,
):
    B, S, H = hidden_states.shape
    q_size = num_heads * head_dim
    k_size = num_kv_heads * head_dim

    # --- QKV projection (tiled Pallas matmul) ---
    qkv = pallas_matmul(hidden_states.reshape(B * S, H), w_qkv)
    qkv = qkv.reshape(B, S, -1)
    q, k, v = jnp.split(qkv, [q_size, q_size + k_size], axis=-1)
    # TODO(synk): fold these layout transposes into the attention BlockSpec index_maps
    # (read head-sliced columns directly) once head_dim is lane-aligned (>=128).
    q = q.reshape(B, S, num_heads, head_dim).transpose(0, 2, 1, 3)
    k = k.reshape(B, S, num_kv_heads, head_dim).transpose(0, 2, 1, 3)
    v = v.reshape(B, S, num_kv_heads, head_dim).transpose(0, 2, 1, 3)

    # --- rotary cos/sin cache (LlamaRotaryEmbedding, rope_scaling=None) — glue ---
    inv_freq = 1.0 / (
        rope_theta ** (jnp.arange(0, head_dim, 2, dtype=jnp.float32) / head_dim)
    )
    t = jnp.arange(max_position_embeddings, dtype=jnp.float32)
    freqs = jnp.outer(t, inv_freq)
    emb = jnp.concatenate([freqs, freqs], axis=-1)
    cos_b = jnp.cos(emb)[position_ids].astype(hidden_states.dtype)            # (B, S, D)
    # Fold the rotate_half sign ([-1]*D/2 ++ [+1]*D/2) into sin so the kernel only rolls.
    sign = jnp.concatenate([-jnp.ones((head_dim // 2,), jnp.float32),
                            jnp.ones((head_dim // 2,), jnp.float32)])
    sin_b = (jnp.sin(emb)[position_ids] * sign).astype(hidden_states.dtype)   # (B, S, D)

    # --- attention core (flash attention with fused RoPE, in-kernel causal mask) ---
    attn = pallas_flash_attention(q, k, v, cos_b, sin_b, causal=causal)       # (B, Hq, S, D)

    # --- output projection (tiled Pallas matmul) ---
    attn = attn.transpose(0, 2, 1, 3).reshape(B * S, num_heads * head_dim)
    return pallas_matmul(attn, w_o).reshape(B, S, H)


# ------------------------------------------------------------------
# Pure-JAX reference (explicit additive causal mask, as in the PyTorch module)
# ------------------------------------------------------------------
def reference_attention(hidden_states, attention_mask, position_ids, w_qkv, w_o,
                        *, num_heads, num_kv_heads, head_dim,
                        rope_theta=10000.0, max_position_embeddings=2048):
    B, S, H = hidden_states.shape
    q_size = num_heads * head_dim
    k_size = num_kv_heads * head_dim
    qkv = hidden_states.reshape(B * S, H) @ w_qkv
    qkv = qkv.reshape(B, S, -1)
    q, k, v = jnp.split(qkv, [q_size, q_size + k_size], axis=-1)
    q = q.reshape(B, S, num_heads, head_dim).transpose(0, 2, 1, 3)
    k = k.reshape(B, S, num_kv_heads, head_dim).transpose(0, 2, 1, 3)
    v = v.reshape(B, S, num_kv_heads, head_dim).transpose(0, 2, 1, 3)

    inv_freq = 1.0 / (rope_theta ** (jnp.arange(0, head_dim, 2, dtype=jnp.float32) / head_dim))
    t = jnp.arange(max_position_embeddings, dtype=jnp.float32)
    emb = jnp.concatenate([jnp.outer(t, inv_freq)] * 2, axis=-1)
    cos = jnp.cos(emb)[position_ids][:, None, :, :]
    sin = jnp.sin(emb)[position_ids][:, None, :, :]

    def rot_half(x):
        x1, x2 = x[..., : head_dim // 2], x[..., head_dim // 2:]
        return jnp.concatenate([-x2, x1], axis=-1)

    q = q * cos + rot_half(q) * sin
    k = k * cos + rot_half(k) * sin

    n_rep = num_heads // num_kv_heads
    k = jnp.repeat(k, n_rep, axis=1)
    v = jnp.repeat(v, n_rep, axis=1)

    scores = jnp.einsum("bhqd,bhkd->bhqk", q, k) / math.sqrt(head_dim)
    scores = scores + attention_mask
    p = jax.nn.softmax(scores.astype(jnp.float32), axis=-1)
    out = jnp.einsum("bhqk,bhkd->bhqd", p, v)
    out = out.transpose(0, 2, 1, 3).reshape(B * S, num_heads * head_dim)
    return (out @ w_o).reshape(B, S, H)


# ------------------------------------------------------------------
if __name__ == "__main__":
    # Small Llama-style config: hidden=32, 4 query heads, 2 KV heads, head_dim=8, seq=8.
    B, S, H = 2, 8, 32
    num_heads, num_kv_heads = 4, 2
    head_dim = H // num_heads
    max_pos = 2048
    rope_theta = 10000.0

    key = jax.random.PRNGKey(0)
    k_x, k_qkv, k_o = jax.random.split(key, 3)

    hidden_states = jax.random.normal(k_x, (B, S, H), dtype=jnp.float32)
    qkv_out = (num_heads + 2 * num_kv_heads) * head_dim
    # Deterministic synthetic weights (attention_bias=False), stored pre-transposed [in, out].
    w_qkv = 0.05 * jax.random.normal(k_qkv, (H, qkv_out), dtype=jnp.float32)
    w_o = 0.05 * jax.random.normal(k_o, (num_heads * head_dim, H), dtype=jnp.float32)

    position_ids = jnp.broadcast_to(jnp.arange(S, dtype=jnp.int32), (B, S))

    out = parallel_llama_attention(
        hidden_states, position_ids, w_qkv, w_o,
        num_heads=num_heads, num_kv_heads=num_kv_heads, head_dim=head_dim,
        rope_theta=rope_theta, max_position_embeddings=max_pos, causal=True,
    )
    out = jax.block_until_ready(out)

    # Reference uses the module's explicit additive causal mask (B, 1, S, S).
    row = jnp.arange(S)[:, None]
    col = jnp.arange(S)[None, :]
    causal_mask = jnp.where(col <= row, 0.0, -1e9).astype(jnp.float32)
    attention_mask = jnp.broadcast_to(causal_mask, (B, 1, S, S))

    ref = reference_attention(
        hidden_states, attention_mask, position_ids, w_qkv, w_o,
        num_heads=num_heads, num_kv_heads=num_kv_heads, head_dim=head_dim,
        rope_theta=rope_theta, max_position_embeddings=max_pos,
    )
    np.testing.assert_allclose(np.asarray(out), np.asarray(ref), rtol=2e-2, atol=2e-3)

    print("KERNEL_OK")
</pallas_src>

<mosaic_0001>
module attributes {stable_mosaic.version = 11 : i64} {
  func.func @_matmul_kernel(%arg0: i32, %arg1: i32, %arg2: i32, %arg3: memref<16x32xf32, #tpu.memory_space<vmem>>, %arg4: memref<32x64xf32, #tpu.memory_space<vmem>>, %arg5: memref<16x64xf32, #tpu.memory_space<vmem>>, %arg6: memref<16x64xf32, #tpu.memory_space<vmem>>) attributes {dimension_semantics = [#tpu.dimension_semantics<parallel>, #tpu.dimension_semantics<parallel>, #tpu.dimension_semantics<arbitrary>], iteration_bounds = array<i64: 1, 1, 1>, scalar_prefetch = 0 : i64, scratch_operands = 1 : i64, tpu.core_type = #tpu.core_type<tc>, window_params = [{transform_indices = @transform_0, window_bounds = array<i64: 16, 32>}, {transform_indices = @transform_1, window_bounds = array<i64: 32, 64>}, {transform_indices = @transform_2, window_bounds = array<i64: 16, 64>}]} {
    %c0_i32 = arith.constant 0 : i32
    %0 = arith.cmpi eq, %arg2, %c0_i32 : i32
    %1 = arith.extui %0 : i1 to i32
    %c0_i32_0 = arith.constant 0 : i32
    %2 = arith.cmpi ne, %1, %c0_i32_0 : i32
    scf.if %2 {
      %cst_10 = arith.constant 0.000000e+00 : f32
      %12 = vector.broadcast %cst_10 : f32 to vector<16x64xf32>
      %c0_11 = arith.constant 0 : index
      %c0_12 = arith.constant 0 : index
      %13 = vector.load %arg6[%c0_11, %c0_12] : memref<16x64xf32, #tpu.memory_space<vmem>>, vector<16x64xf32>
      tpu.vector_store %arg6[%c0_11, %c0_12], %12 {strides = array<i32>} : memref<16x64xf32, #tpu.memory_space<vmem>>, vector<16x64xf32>,
    } else {
    }
    %c0 = arith.constant 0 : index
    %c0_1 = arith.constant 0 : index
    %3 = vector.load %arg6[%c0, %c0_1] : memref<16x64xf32, #tpu.memory_space<vmem>>, vector<16x64xf32>
    %c0_2 = arith.constant 0 : index
    %c0_3 = arith.constant 0 : index
    %4 = vector.load %arg3[%c0_2, %c0_3] : memref<16x32xf32, #tpu.memory_space<vmem>>, vector<16x32xf32>
    %c0_4 = arith.constant 0 : index
    %c0_5 = arith.constant 0 : index
    %5 = vector.load %arg4[%c0_4, %c0_5] : memref<32x64xf32, #tpu.memory_space<vmem>>, vector<32x64xf32>
    %cst = arith.constant dense<0.000000e+00> : vector<16x64xf32>
    %6 = tpu.matmul %4, %5, %cst {dimension_numbers = #tpu.dot_dimension_numbers<[1], [0], [0], [1], [0, 0, 1, 1], [], []>} : vector<16x32xf32>, vector<32x64xf32>, vector<16x64xf32> -> vector<16x64xf32>
    %7 = arith.addf %3, %6 : vector<16x64xf32>
    %c0_6 = arith.constant 0 : index
    %c0_7 = arith.constant 0 : index
    %8 = vector.load %arg6[%c0_6, %c0_7] : memref<16x64xf32, #tpu.memory_space<vmem>>, vector<16x64xf32>
    tpu.vector_store %arg6[%c0_6, %c0_7], %7 {strides = array<i32>} : memref<16x64xf32, #tpu.memory_space<vmem>>, vector<16x64xf32>,
    %c0_i32_8 = arith.constant 0 : i32
    %9 = arith.cmpi eq, %arg2, %c0_i32_8 : i32
    %10 = arith.extui %9 : i1 to i32
    %c0_i32_9 = arith.constant 0 : i32
    %11 = arith.cmpi ne, %10, %c0_i32_9 : i32
    scf.if %11 {
      %c0_10 = arith.constant 0 : index
      %c0_11 = arith.constant 0 : index
      %12 = vector.load %arg6[%c0_10, %c0_11] : memref<16x64xf32, #tpu.memory_space<vmem>>, vector<16x64xf32>
      %c0_12 = arith.constant 0 : index
      %c0_13 = arith.constant 0 : index
      %13 = vector.load %arg5[%c0_12, %c0_13] : memref<16x64xf32, #tpu.memory_space<vmem>>, vector<16x64xf32>
      tpu.vector_store %arg5[%c0_12, %c0_13], %12 {strides = array<i32>} : memref<16x64xf32, #tpu.memory_space<vmem>>, vector<16x64xf32>,
    } else {
    }
    return
  }
  func.func @transform_0(%arg0: i32, %arg1: i32, %arg2: i32) -> (i32, i32) {
    %c0_i32 = arith.constant 0 : i32
    return %arg0, %arg2 : i32, i32
  }
  func.func @transform_1(%arg0: i32, %arg1: i32, %arg2: i32) -> (i32, i32) {
    %c0_i32 = arith.constant 0 : i32
    return %arg2, %arg1 : i32, i32
  }
  func.func @transform_2(%arg0: i32, %arg1: i32, %arg2: i32) -> (i32, i32) {
    %c0_i32 = arith.constant 0 : i32
    return %arg0, %arg1 : i32, i32
  }
}

</mosaic_0001>

<bundles_post_ra>
// kernel: tpu_custom_call.1
= control target key start
LH: loop header
LB: loop body
LE: loop exit
PB: predicated region body
PF: predicated region fallthrough
CT: control target
= control target key end

     0   :  { %7 = vsyncpa [#allocation4], 0  ;;  %s256_s0 = inlined_call_operand.hbm [shape: f32[16,32], index: 0, kind: input, shape index: {}]   ;;  %s257_s1 = inlined_call_operand.hbm [shape: f32[32,64], index: 1, kind: input, shape index: {}]   ;;  %s258_s2 = inlined_call_operand.hbm [shape: f32[16,64], index: 2, kind: output, shape index: {}]  }
   0x1   :  { %8 = vsyncpa [#allocation7], 0 }
   0x2   :  { %9 = vsyncpa [#allocation5], 0  ;;  %s14_s11 = sshll.u32 %s256_s0, 4  ;;  %s211_s12 = smov [#allocation3]   ;;  %s15_s11 = int_to_ptr.hbm [resolvable:$true] %s14_s11 }
   0x3   :  { %s16_s13 = sshll.u32 %s211_s12, 4  ;;  %s27_s16 = sshll.u32 %s257_s1, 4  ;;  %s17_s13 = int_to_ptr.vmem [resolvable:$true] %s16_s13  ;;  %s28_s16 = int_to_ptr.hbm [resolvable:$true] %s27_s16 }
   0x4   :  { %s212_s17 = smov 128   ;;  %s213_s18 = smov 8  }
   0x5   :  { %22 = dma.hbm_to_vmem [thread:$0]  %s15_s11, 256, %s17_s13, [#allocation4], %s212_s17, %s212_s17, %s213_s18  }
   0x6   :  { %s214_s19 = smov [#allocation6]  }
   0x7   :  { %s29_s20 = sshll.u32 %s214_s19, 4  ;;  %s30_s20 = int_to_ptr.vmem [resolvable:$true] %s29_s20 }
   0x8   :  { %35 = dma.hbm_to_vmem [thread:$0]  %s28_s16, 512, %s30_s20, [#allocation7], %s212_s17, %s212_s17, %s213_s18  }
   0x9   :  { %205 = dma.done.wait [#allocation4], 256  }
   0xa   :  { %206 = vsyncadd [#allocation4], 4294967040 }
   0xb   :  { %207 = dma.done.wait [#allocation7], 512  }
   0xc   :  { %208 = vsyncadd [#allocation7], 4294966784  ;;  %vm48_vm0 = vcmask 523264   ;;  %v215_v0 = vmov 0.0   ;;  %v58_v1 = vld [vmem:[#allocation6 + $0x18] sm:$0xff]  ;;  %v57_v2 = vld [vmem:[#allocation6 + $0x10] sm:$0xff] }
   0xd   :  { %49 = vst.msk [vmem:[#allocation2] sm:$0xff] %vm48_vm0, %v215_v0  ;;  %78 = vmatpush.msra.mxu0 %v58_v1  ;;  %123 = vmatpush.msra.mxu1 %v58_v1  ;;  %v56_v3 = vld [vmem:[#allocation6 + $0x8] sm:$0xff]  ;;  %v55_v4 = vld [vmem:[#allocation6] sm:$0xff]  ;;  %v53_v5 = vld [vmem:[#allocation3] sm:$0xff]  ;;  %vm59_vm1 = vcmask 261120   ;;  %s216_s0 = smov [#allocation8]  }
   0xe   :  { %50 = vst.msk [vmem:[#allocation2 + $0x8] sm:$0xff] %vm48_vm0, %v215_v0  ;;  %v54_v6 = vld [vmem:[#allocation3 + $0x8] sm:$0xff]  ;;  %s105_s1 = sshll.u32 %s216_s0, 4  ;;  %s107_s23 = sshll.u32 %s258_s2, 4  ;;  %s106_s1 = int_to_ptr.vmem [resolvable:$true] %s105_s1  ;;  %s108_s23 = int_to_ptr.hbm [resolvable:$true] %s107_s23 }
   0xf   :  { %79 = vmatpush.msra.mxu0 %v57_v2  ;;  %124 = vmatpush.msra.mxu1 %v57_v2 }
  0x11   :  { %80 = vmatpush.msra.mxu0 %v56_v3  ;;  %125 = vmatpush.msra.mxu1 %v56_v3 }
  0x13   :  { %81 = vmatpush.msra.mxu0 %v55_v4  ;;  %126 = vmatpush.msra.mxu1 %v55_v4 }
  0x14   :  { %121 = vmatmul.msk.f32.vlgmr.msra.gmra.mxu0 %vm59_vm1, %v53_v5  ;;  %122 = vmatmul.msk.f32.vlgmr.msra.gmra.mxu1 %vm59_vm1, %v54_v6  ;;  %v51_v7 = vld [vmem:[#allocation2] sm:$0xff] }
  0x15   :  { %v52_v8 = vld [vmem:[#allocation2 + $0x8] sm:$0xff] }
  0x91   :  { %v83_v9 = vpop.f32.mrf.mxu0  ;;  %v86_v10 = vpop.f32.mrf.mxu1 }
  0x92   :  { %v89_v11 = vadd.f32 %v83_v9, %v51_v7  ;;  %v90_v12 = vadd.f32 %v86_v10, %v52_v8 }
  0x94   :  { %92 = vst.msk [vmem:[#allocation2] sm:$0xff] %vm48_vm0, %v89_v11 }
  0x95   :  { %93 = vst.msk [vmem:[#allocation2 + $0x8] sm:$0xff] %vm48_vm0, %v90_v12 }
  0x9b   :  { %v97_v13 = vld [vmem:[#allocation2] sm:$0xff] }
  0x9c   :  { %v98_v14 = vld [vmem:[#allocation2 + $0x8] sm:$0xff]  ;;  %99 = vst.msk [vmem:[#allocation8] sm:$0xff] %vm48_vm0, %v97_v13 }
  0x9d   :  { %100 = vst.msk [vmem:[#allocation8 + $0x8] sm:$0xff] %vm48_vm0, %v98_v14 }
  0x9e   :  { %113 = dma.vmem_to_hbm [thread:$0]  %s106_s1, 256, %s108_s23, [#allocation5], %s212_s17, %s212_s17, %s213_s18  }
  0x9f   :  { %209 = dma.done.wait [#allocation5], 256  }
  0xa0   :  { %210 = vsyncadd [#allocation5], 4294967040 }
  0xa1   :  { %118 = vsyncpa [#allocation4], 1 }
  0xa2   :  { %119 = vsyncpa [#allocation7], 1 }
  0xa3   :  { %120 = vsyncpa [#allocation5], 1 }

</bundles_post_ra>
